<compile_context>
chip_gen: v7x
topology: tpu7x:2x2x1
jax: 0.10.0
libtpu: 0.0.40
codegen_flags: <defaults>
</compile_context>

<pallas_src>
import functools

import jax
import jax.numpy as jnp
from jax import lax
from jax.experimental import pallas as pl
from jax.experimental.pallas import tpu as pltpu

_ALPHA = 0.25
_GAMMA = 2.0
_LOG_CLAMP = -100.0            # F.binary_cross_entropy clamps log terms at -100
_LANES = 128
_SUBLANES = 8
_GRANULE = _SUBLANES * _LANES  # 1024 elements = one f32 vreg
_TARGET_TILE_BYTES = 2 * 1024 * 1024   # per input, per pipeline buffer


def _focal_loss_kernel(p_ref, t_ref, o_ref, *, alpha, gamma, hard_targets,
                       tile_rows, total, needs_mask):
    # The output block index is constant along the (single, "arbitrary") grid
    # axis, so o_ref stays resident in VMEM and acts as the accumulator.
    @pl.when(pl.program_id(0) == 0)
    def _init():
        o_ref[...] = jnp.zeros_like(o_ref)

    p = p_ref[...].astype(jnp.float32)
    t = t_ref[...].astype(jnp.float32)

    if hard_targets:
        # Binary-target fast path: 1 EUP transcendental / element.
        # pt = p if t==1 else (1-p); bce = -clamp(log(pt)).
        pt = t * p + (1.0 - t) * (1.0 - p)
        bce = -jnp.maximum(jnp.log(pt), _LOG_CLAMP)
    else:
        # General (soft-label) path, exactly the reference math: 3 EUP / element.
        log_p = jnp.maximum(jnp.log(p), _LOG_CLAMP)
        log_1mp = jnp.maximum(jnp.log(1.0 - p), _LOG_CLAMP)
        bce = -(t * log_p + (1.0 - t) * log_1mp)
        pt = jnp.exp(-bce)

    x = 1.0 - pt
    if gamma == 2.0:
        mod = x * x                       # no float pow: saves 2 EUP transcendentals/elem
    elif gamma == int(gamma) and gamma >= 0.0:
        mod = lax.integer_pow(x, int(gamma))
    else:
        mod = jnp.power(jnp.maximum(x, 0.0), gamma)
    focal = alpha * mod * bce             # (tile_rows, 128)

    if needs_mask:
        # The last grid tile (and any wrapper zero-padding) may cover elements
        # past the true input; zero them out.  OOB rows of a partial block hold
        # undefined VMEM data (possibly NaN) -> select AFTER the math, the
        # where() drops them regardless of value.  Pure VPU work.
        start_row = pl.program_id(0) * tile_rows
        row = lax.broadcasted_iota(jnp.int32, focal.shape, 0) + start_row
        lane = lax.broadcasted_iota(jnp.int32, focal.shape, 1)
        elem = row * _LANES + lane
        focal = jnp.where(elem < total, focal, 0.0)

    # Fold the tile down to a single (8,128) vreg with plain VPU adds; the one
    # and only cross-lane/sublane reduction happens in the wrapper.
    partial = jnp.sum(focal.reshape(-1, _SUBLANES, _LANES), axis=0)
    o_ref[...] += partial


def focal_loss(preds, targets, alpha=_ALPHA, gamma=_GAMMA, *,
               hard_targets=False, max_tile_rows=None):
    """Pallas TPU focal loss (mean reduction).

    preds/targets: matching shapes, any dtype castable to f32 (bf16 halves HBM
    traffic).  hard_targets=True enables the single-log fast path, valid only
    for {0,1} targets.  max_tile_rows is a test/tuning knob.
    """
    assert preds.shape == targets.shape, (preds.shape, targets.shape)
    total = int(preds.size)
    assert total > 0

    p_flat = jnp.ravel(preds)
    t_flat = jnp.ravel(targets)

    if total % _GRANULE == 0:
        # Zero-copy: ravel + reshape are free views for contiguous inputs.
        padded_total = total
    else:
        # TODO(synk): eliminate this copy for ragged sizes too (scalar-prefetch
        # count + allow_input_fusion, or a wrapper-side tail sum); the aligned
        # path above is already zero-copy.
        padded_total = ((total + _GRANULE - 1) // _GRANULE) * _GRANULE
        pad = padded_total - total
        p_flat = jnp.pad(p_flat, (0, pad))
        t_flat = jnp.pad(t_flat, (0, pad))

    rows = padded_total // _LANES                      # multiple of 8
    itemsize = max(p_flat.dtype.itemsize, t_flat.dtype.itemsize)

    # ~2 MiB tiles per input per buffer (4096 rows f32 / 8192 rows bf16);
    # 2 inputs x 2 buffers => 8 MiB pipelined, safe on v5e/v6e/v7x.
    tile_rows_cap = max(_SUBLANES, _TARGET_TILE_BYTES // (_LANES * itemsize))
    if max_tile_rows is not None:
        cap = max(_SUBLANES, (int(max_tile_rows) // _SUBLANES) * _SUBLANES)
        tile_rows_cap = min(tile_rows_cap, cap)
    tile_rows = min(tile_rows_cap, rows)               # multiple of 8

    n_tiles = pl.cdiv(rows, tile_rows)
    covered = n_tiles * tile_rows * _LANES             # elements touched by the grid
    needs_mask = covered != total

    p2d = p_flat.reshape(rows, _LANES)
    t2d = t_flat.reshape(rows, _LANES)

    kernel = functools.partial(
        _focal_loss_kernel,
        alpha=float(alpha), gamma=float(gamma),
        hard_targets=bool(hard_targets),
        tile_rows=int(tile_rows), total=total, needs_mask=bool(needs_mask))

    n_transc = 1 if hard_targets else 3
    cost = pl.CostEstimate(
        flops=14 * covered,
        transcendentals=n_transc * covered,
        bytes_accessed=(p2d.size * p2d.dtype.itemsize
                        + t2d.size * t2d.dtype.itemsize
                        + _SUBLANES * _LANES * 4))

    acc = pl.pallas_call(
        kernel,
        out_shape=jax.ShapeDtypeStruct((_SUBLANES, _LANES), jnp.float32),
        grid=(n_tiles,),
        in_specs=[
            pl.BlockSpec((tile_rows, _LANES), lambda i: (i, 0)),
            pl.BlockSpec((tile_rows, _LANES), lambda i: (i, 0)),
        ],
        out_specs=pl.BlockSpec((_SUBLANES, _LANES), lambda i: (0, 0)),
        compiler_params=pltpu.CompilerParams(
            dimension_semantics=("arbitrary",),
            # 2 inputs x 2 buffers x <=2 MiB tile + accumulator + slack; also
            # lifts v5e's 16 MiB scoped default, and is <= the v6e/v7x defaults.
            vmem_limit_bytes=32 * 1024 * 1024,
        ),
        cost_estimate=cost,
    )(p2d, t2d)

    # Single cross-lane/sublane reduction; mean over the TRUE element count
    # (padded / out-of-bounds elements contributed exactly 0 to the sum).
    return jnp.sum(acc) / total


def _focal_loss_ref(preds, targets, alpha=_ALPHA, gamma=_GAMMA):
    preds = preds.astype(jnp.float32)
    targets = targets.astype(jnp.float32)
    log_p = jnp.maximum(jnp.log(preds), _LOG_CLAMP)
    log_1mp = jnp.maximum(jnp.log(1.0 - preds), _LOG_CLAMP)
    bce = -(targets * log_p + (1.0 - targets) * log_1mp)
    pt = jnp.exp(-bce)
    return jnp.mean(alpha * (1.0 - pt) ** gamma * bce)


if __name__ == "__main__":
    key = jax.random.PRNGKey(0)
    k1, k2, k3, k4, k5, k6 = jax.random.split(key, 6)

    # 1) NCHW, binary targets, aligned size (zero-copy path), both kernel paths.
    B, C, H, W = 2, 4, 16, 16
    preds = jax.nn.sigmoid(jax.random.normal(k1, (B, C, H, W), dtype=jnp.float32))
    targets = (jax.random.uniform(k2, (B, C, H, W)) > 0.5).astype(jnp.float32)
    ref = jax.block_until_ready(_focal_loss_ref(preds, targets))
    out_soft = jax.block_until_ready(focal_loss(preds, targets, hard_targets=False))
    out_hard = jax.block_until_ready(focal_loss(preds, targets, hard_targets=True))
    assert jnp.allclose(out_soft, ref, atol=2e-6, rtol=1e-5), (out_soft, ref)
    assert jnp.allclose(out_hard, ref, atol=2e-6, rtol=1e-5), (out_hard, ref)

    # 2) Ragged size, soft (non-binary) targets: minimal-pad path + element mask.
    preds2 = jax.nn.sigmoid(jax.random.normal(k3, (3, 5, 7), dtype=jnp.float32))
    targets2 = jax.random.uniform(k4, (3, 5, 7), dtype=jnp.float32)
    ref2 = jax.block_until_ready(_focal_loss_ref(preds2, targets2))
    out2 = jax.block_until_ready(focal_loss(preds2, targets2, hard_targets=False))
    assert jnp.allclose(out2, ref2, atol=2e-6, rtol=1e-5), (out2, ref2)

    # 3) Multi-tile grid with a partial last block on the zero-copy path
    #    (accumulator across grid steps + OOB masking), binary targets.
    preds3 = jax.nn.sigmoid(jax.random.normal(k5, (3, 4, 16, 16), dtype=jnp.float32))
    targets3 = (jax.random.uniform(k6, (3, 4, 16, 16)) > 0.5).astype(jnp.float32)
    ref3 = jax.block_until_ready(_focal_loss_ref(preds3, targets3))
    out3 = jax.block_until_ready(
        focal_loss(preds3, targets3, hard_targets=True, max_tile_rows=16))
    assert jnp.allclose(out3, ref3, atol=2e-6, rtol=1e-5), (out3, ref3)

    print("KERNEL_OK")
</pallas_src>

<mosaic_0001>
module attributes {stable_mosaic.version = 11 : i64} {
  func.func @_focal_loss_kernel(%arg0: i32, %arg1: memref<16x128xf32, #tpu.memory_space<vmem>>, %arg2: memref<16x128xf32, #tpu.memory_space<vmem>>, %arg3: memref<8x128xf32, #tpu.memory_space<vmem>>) attributes {dimension_semantics = [#tpu.dimension_semantics<arbitrary>], iteration_bounds = array<i64: 1>, scalar_prefetch = 0 : i64, scratch_operands = 0 : i64, tpu.core_type = #tpu.core_type<tc>, window_params = [{transform_indices = @transform_0, window_bounds = array<i64: 16, 128>}, {transform_indices = @transform_1, window_bounds = array<i64: 16, 128>}, {pipeline_mode = #tpu.pipeline_mode<synchronous>, transform_indices = @transform_2, window_bounds = array<i64: 8, 128>}]} {
    %c0_i32 = arith.constant 0 : i32
    %0 = arith.cmpi eq, %arg0, %c0_i32 : i32
    %1 = arith.extui %0 : i1 to i32
    %c0_i32_0 = arith.constant 0 : i32
    %2 = arith.cmpi ne, %1, %c0_i32_0 : i32
    scf.if %2 {
      %cst_16 = arith.constant 0.000000e+00 : f32
      %34 = vector.broadcast %cst_16 : f32 to vector<8x128xf32>
      %c0_17 = arith.constant 0 : index
      %c0_18 = arith.constant 0 : index
      %35 = vector.load %arg3[%c0_17, %c0_18] : memref<8x128xf32, #tpu.memory_space<vmem>>, vector<8x128xf32>
      tpu.vector_store %arg3[%c0_17, %c0_18], %34 {strides = array<i32>} : memref<8x128xf32, #tpu.memory_space<vmem>>, vector<8x128xf32>,
    } else {
    }
    %c0 = arith.constant 0 : index
    %c0_1 = arith.constant 0 : index
    %3 = vector.load %arg1[%c0, %c0_1] : memref<16x128xf32, #tpu.memory_space<vmem>>, vector<16x128xf32>
    %c0_2 = arith.constant 0 : index
    %c0_3 = arith.constant 0 : index
    %4 = vector.load %arg2[%c0_2, %c0_3] : memref<16x128xf32, #tpu.memory_space<vmem>>, vector<16x128xf32>
    %5 = math.log %3 : vector<16x128xf32>
    %cst = arith.constant -1.000000e+02 : f32
    %6 = vector.broadcast %cst : f32 to vector<16x128xf32>
    %7 = arith.maximumf %5, %6 : vector<16x128xf32>
    %cst_4 = arith.constant 1.000000e+00 : f32
    %8 = vector.broadcast %cst_4 : f32 to vector<16x128xf32>
    %9 = arith.subf %8, %3 : vector<16x128xf32>
    %10 = math.log %9 : vector<16x128xf32>
    %cst_5 = arith.constant -1.000000e+02 : f32
    %11 = vector.broadcast %cst_5 : f32 to vector<16x128xf32>
    %12 = arith.maximumf %10, %11 : vector<16x128xf32>
    %13 = arith.mulf %4, %7 : vector<16x128xf32>
    %cst_6 = arith.constant 1.000000e+00 : f32
    %14 = vector.broadcast %cst_6 : f32 to vector<16x128xf32>
    %15 = arith.subf %14, %4 : vector<16x128xf32>
    %16 = arith.mulf %15, %12 : vector<16x128xf32>
    %17 = arith.addf %13, %16 : vector<16x128xf32>
    %cst_7 = arith.constant 0.000000e+00 : f32
    %18 = vector.broadcast %cst_7 : f32 to vector<16x128xf32>
    %19 = arith.subf %18, %17 : vector<16x128xf32>
    %cst_8 = arith.constant 0.000000e+00 : f32
    %20 = vector.broadcast %cst_8 : f32 to vector<16x128xf32>
    %21 = arith.subf %20, %19 : vector<16x128xf32>
    %22 = math.exp %21 : vector<16x128xf32>
    %cst_9 = arith.constant 1.000000e+00 : f32
    %23 = vector.broadcast %cst_9 : f32 to vector<16x128xf32>
    %24 = arith.subf %23, %22 : vector<16x128xf32>
    %25 = arith.mulf %24, %24 : vector<16x128xf32>
    %cst_10 = arith.constant 2.500000e-01 : f32
    %26 = vector.broadcast %cst_10 : f32 to vector<16x128xf32>
    %27 = arith.mulf %26, %25 : vector<16x128xf32>
    %28 = arith.mulf %27, %19 : vector<16x128xf32>
    %29 = vector.shape_cast %28 : vector<16x128xf32> to vector<2x8x128xf32>
    %cst_11 = arith.constant dense<0.000000e+00> : vector<8x128xf32>
    %30 = vector.multi_reduction <add>, %29, %cst_11 [0] : vector<2x8x128xf32> to vector<8x128xf32>
    %c0_12 = arith.constant 0 : index
    %c0_13 = arith.constant 0 : index
    %31 = vector.load %arg3[%c0_12, %c0_13] : memref<8x128xf32, #tpu.memory_space<vmem>>, vector<8x128xf32>
    %32 = arith.addf %31, %30 : vector<8x128xf32>
    %c0_14 = arith.constant 0 : index
    %c0_15 = arith.constant 0 : index
    %33 = vector.load %arg3[%c0_14, %c0_15] : memref<8x128xf32, #tpu.memory_space<vmem>>, vector<8x128xf32>
    tpu.vector_store %arg3[%c0_14, %c0_15], %32 {strides = array<i32>} : memref<8x128xf32, #tpu.memory_space<vmem>>, vector<8x128xf32>,
    return
  }
  func.func @transform_0(%arg0: i32) -> (i32, i32) {
    %c0_i32 = arith.constant 0 : i32
    %c0_i32_0 = arith.constant 0 : i32
    return %arg0, %c0_i32 : i32, i32
  }
  func.func @transform_1(%arg0: i32) -> (i32, i32) {
    %c0_i32 = arith.constant 0 : i32
    %c0_i32_0 = arith.constant 0 : i32
    return %arg0, %c0_i32 : i32, i32
  }
  func.func @transform_2(%arg0: i32) -> (i32, i32) {
    %c0_i32 = arith.constant 0 : i32
    %c0_i32_0 = arith.constant 0 : i32
    %c0_i32_1 = arith.constant 0 : i32
    return %c0_i32, %c0_i32_0 : i32, i32
  }
}

</mosaic_0001>

<bundles_post_ra>
// kernel: tpu_custom_call.1
= control target key start
LH: loop header
LB: loop body
LE: loop exit
PB: predicated region body
PF: predicated region fallthrough
CT: control target
= control target key end

     0   :  { %7 = vsyncpa [#allocation3], 0  ;;  %s253_s0 = inlined_call_operand.hbm [shape: f32[16,128], index: 0, kind: input, shape index: {}]   ;;  %s254_s1 = inlined_call_operand.hbm [shape: f32[16,128], index: 1, kind: input, shape index: {}]   ;;  %s255_s2 = inlined_call_operand.hbm [shape: f32[8,128], index: 2, kind: output, shape index: {}]  }
   0x1   :  { %8 = vsyncpa [#allocation6], 0 }
   0x2   :  { %9 = vsyncpa [#allocation4], 0  ;;  %s197_s9 = smov [#allocation2]   ;;  %s125_s13 = scalar_lea.hbm %s253_s0, 256 }
   0x3   :  { %s15_s10 = sshll.u32 %s197_s9, 4  ;;  %p126_p0 = scmp.ne.s32.totalorder %s253_s0, %s125_s13  ;;  %s16_s10 = int_to_ptr.vmem [resolvable:$true] %s15_s10 }
   0x4   :  { %p129_p1 = scmp.lt.u32.totalorder %s125_s13, %s253_s0 }
   0x6   :  { %p131_p2 = pnand %p129_p1, %p126_p0 }
   0x8   :  { %134 = shalt.err (!%p131_p2)
}
   0x9   :  { %s135_s18 = scalar_lea.vmem %s16_s10, 256  ;;  %p140_p4 = scmp.lt.s32.totalorder %s16_s10, %s16_s10 }
   0xa   :  { %p136_p3 = scmp.ne.s32.totalorder %s16_s10, %s135_s18  ;;  %p141_p5 = scmp.lt.s32.totalorder %s135_s18, %s135_s18 }
   0xc   :  { %p142_p6 = por %p141_p5, %p140_p4 }
   0xe   :  { %p143_p7 = pnand %p142_p6, %p136_p3 }
  0x10   :  { %146 = shalt.err (!%p143_p7)
}
  0x11   :  { %s198_s19 = smov 128   ;;  %s199_s20 = smov 8  }
  0x12   :  { %21 = dma.hbm_to_vmem [thread:$0]  %s253_s0, 256, %s16_s10, [#allocation3], %s198_s19, %s198_s19, %s199_s20  }
  0x13   :  { %s200_s23 = smov [#allocation5]   ;;  %s147_s27 = scalar_lea.hbm %s254_s1, 256 }
  0x14   :  { %s27_s24 = sshll.u32 %s200_s23, 4  ;;  %p148_p8 = scmp.ne.s32.totalorder %s254_s1, %s147_s27  ;;  %s28_s24 = int_to_ptr.vmem [resolvable:$true] %s27_s24 }
  0x15   :  { %p151_p9 = scmp.lt.u32.totalorder %s147_s27, %s254_s1 }
  0x17   :  { %p153_p10 = pnand %p151_p9, %p148_p8 }
  0x19   :  { %156 = shalt.err (!%p153_p10)
}
  0x1a   :  { %s157_s4 = scalar_lea.vmem %s28_s24, 256  ;;  %p162_p12 = scmp.lt.s32.totalorder %s28_s24, %s28_s24 }
  0x1b   :  { %p158_p11 = scmp.ne.s32.totalorder %s28_s24, %s157_s4  ;;  %p163_p13 = scmp.lt.s32.totalorder %s157_s4, %s157_s4 }
  0x1d   :  { %p164_p0 = por %p163_p13, %p162_p12 }
  0x1f   :  { %p165_p1 = pnand %p164_p0, %p158_p11 }
  0x21   :  { %168 = shalt.err (!%p165_p1)
}
  0x22   :  { %33 = dma.hbm_to_vmem [thread:$0]  %s254_s1, 256, %s28_s24, [#allocation6], %s198_s19, %s198_s19, %s199_s20  }
  0x23   :  { %191 = dma.done.wait [#allocation3], 256  }
  0x24   :  { %192 = vsyncadd [#allocation3], 4294967040 }
  0x25   :  { %193 = dma.done.wait [#allocation6], 256  }
  0x26   :  { %194 = vsyncadd [#allocation6], 4294967040  ;;  %v45_v0 = vld [vmem:[#allocation2] sm:$0xff]  ;;  %v46_v1 = vld [vmem:[#allocation2 + $0x8] sm:$0xff]  ;;  %s201_s1 = smov [#allocation7]  }
  0x27   :  { %113 = vlog2.f32 %v45_v0  ;;  %v55_v2 = vsub.f32 1.0, %v45_v0  ;;  %v56_v3 = vsub.f32 1.0, %v46_v1  ;;  %v47_v5 = vld [vmem:[#allocation5] sm:$0xff]  ;;  %v48_v7 = vld [vmem:[#allocation5 + $0x8] sm:$0xff]  ;;  %s97_s6 = sshll.u32 %s201_s1, 4  ;;  %s98_s6 = int_to_ptr.vmem [resolvable:$true] %s97_s6 }
  0x28   :  { %115 = vlog2.f32 %v46_v1  ;;  %v65_v14 = vsub.f32 1.0, %v47_v5  ;;  %v66_v17 = vsub.f32 1.0, %v48_v7  ;;  %s169_s7 = scalar_lea.vmem %s98_s6, 128  ;;  %p174_p3 = scmp.lt.s32.totalorder %s98_s6, %s98_s6 }
  0x29   :  { %117 = vlog2.f32 %v55_v2  ;;  %p170_p2 = scmp.ne.s32.totalorder %s98_s6, %s169_s7  ;;  %p175_p4 = scmp.lt.s32.totalorder %s169_s7, %s169_s7 }
  0x2a   :  { %119 = vlog2.f32 %v56_v3 }
  0x2b   :  { %p176_p5 = por %p175_p4, %p174_p3 }
  0x2d   :  { %p177_p6 = pnand %p176_p5, %p170_p2 }
  0x31   :  { %v114_v4 = vpop.eup %113 }
  0x32   :  { %v116_v6 = vpop.eup %115  ;;  %v50_v8 = vmul.f32 0.6931472, %v114_v4 }
  0x33   :  { %v118_v9 = vpop.eup %117  ;;  %v52_v10 = vmul.f32 0.6931472, %v116_v6 }
  0x34   :  { %v120_v11 = vpop.eup %119  ;;  %v53_v12 = vmax.f32 %v50_v8, -100.0  ;;  %v58_v13 = vmul.f32 0.6931472, %v118_v9 }
  0x35   :  { %v54_v15 = vmax.f32 %v52_v10, -100.0  ;;  %v60_v16 = vmul.f32 0.6931472, %v120_v11 }
  0x36   :  { %v61_v18 = vmax.f32 %v58_v13, -100.0  ;;  %v63_v19 = vmul.f32 %v53_v12, %v47_v5 }
  0x37   :  { %v62_v20 = vmax.f32 %v60_v16, -100.0  ;;  %v64_v21 = vmul.f32 %v54_v15, %v48_v7 }
  0x38   :  { %v67_v22 = vmul.f32 %v65_v14, %v61_v18 }
  0x39   :  { %v68_v23 = vmul.f32 %v66_v17, %v62_v20 }
  0x3a   :  { %v69_v24 = vadd.f32 %v67_v22, %v63_v19 }
  0x3b   :  { %v70_v25 = vadd.f32 %v68_v23, %v64_v21 }
  0x3c   :  { %v71_v26 = vsub.f32 0.0, %v69_v24 }
  0x3d   :  { %v72_v27 = vsub.f32 0.0, %v70_v25 }
  0x3e   :  { %v73_v28 = vsub.f32 0.0, %v71_v26 }
  0x3f   :  { %v74_v29 = vsub.f32 0.0, %v72_v27 }
  0x40   :  { %v75_v30 = vmul.f32 1.442695, %v73_v28 }
  0x41   :  { %v77_v31 = vmul.f32 1.442695, %v74_v29 }
  0x42   :  { %121 = vpow2.f32 %v75_v30 }
  0x43   :  { %123 = vpow2.f32 %v77_v31 }
  0x4c   :  { %v122_v32 = vpop.eup %121 }
  0x4d   :  { %v124_v33 = vpop.eup %123  ;;  %v79_v34 = vsub.f32 1.0, %v122_v32 }
  0x4e   :  { %v80_v35 = vsub.f32 1.0, %v124_v33 }
  0x4f   :  { %v81_v36 = vmul.f32 %v79_v34, %v79_v34 }
  0x50   :  { %v82_v37 = vmul.f32 %v80_v35, %v80_v35 }
  0x51   :  { %v83_v38 = vmul.f32 0.25, %v81_v36 }
  0x52   :  { %v84_v39 = vmul.f32 0.25, %v82_v37 }
  0x53   :  { %v85_v40 = vmul.f32 %v83_v38, %v71_v26 }
  0x54   :  { %v86_v41 = vmul.f32 %v84_v39, %v72_v27 }
  0x56   :  { %v87_v42 = vadd.f32 %v86_v41, %v85_v40 }
  0x58   :  { %90 = vst [vmem:[#allocation7] sm:$0xff] %v87_v42 }
  0x59   :  { %180 = shalt.err (!%p177_p6)
}
  0x5a   :  { %s181_s10 = scalar_lea.hbm %s255_s2, 128 }
  0x5b   :  { %p182_p7 = scmp.ne.s32.totalorder %s255_s2, %s181_s10  ;;  %p185_p8 = scmp.lt.u32.totalorder %s181_s10, %s255_s2 }
  0x5d   :  { %p187_p9 = pnand %p185_p8, %p182_p7 }
  0x5f   :  { %190 = shalt.err (!%p187_p9)
}
  0x60   :  { %100 = dma.vmem_to_hbm [thread:$0]  %s98_s6, 128, %s255_s2, [#allocation4]  }
  0x61   :  { %195 = dma.done.wait [#allocation4], 128  }
  0x62   :  { %196 = vsyncadd [#allocation4], 4294967168 }
  0x63   :  { %104 = vsyncpa [#allocation3], 1 }
  0x64   :  { %105 = vsyncpa [#allocation6], 1 }
  0x65   :  { %106 = vsyncpa [#allocation4], 1 }

</bundles_post_ra>
